<compile_context>
chip_gen: v5e
topology: v5e:2x2
jax: 0.10.0
libtpu: 0.0.40
codegen_flags: <defaults>
</compile_context>

<pallas_src>
import numpy as np
import jax
import jax.numpy as jnp
from jax.experimental import pallas as pl
from jax.experimental.pallas import tpu as pltpu

# ---------------- DLRM configuration (small, deterministic) ----------------
BATCH = 1024                            # total batch rows
TB = 256                                # batch tile (lane axis), multiple of 128
LN_BOT = (13, 64, 32, 16)               # bottom MLP layer sizes
NUM_SPARSE = 3                          # number of sparse embedding features
EMB_DIM = LN_BOT[-1]                    # 16 (must match bottom MLP output)
NUM_FEAT = 1 + NUM_SPARSE               # dense feature + embeddings
ARCH_INTERACTION_ITSELF = False
_OFFSET = 1 if ARCH_INTERACTION_ITSELF else 0
# lower-triangular pair indices, matching the PyTorch li/lj construction
_PAIRS = [(i, j) for i in range(NUM_FEAT) for j in range(i + _OFFSET)]
NUM_INT = len(_PAIRS)
LN_TOP = (EMB_DIM + NUM_INT, 32, 16, 1)  # top MLP layer sizes
SIGMOID_BOT = -1                         # ReLU everywhere in bottom MLP
SIGMOID_TOP = len(LN_TOP) - 2            # Sigmoid on last top layer
LOSS_THRESHOLD = 0.0                     # no clamping (matches default)

N_BOT = len(LN_BOT) - 1
N_TOP = len(LN_TOP) - 1

COMPUTE_DTYPE = jnp.bfloat16             # MXU operand dtype (f32 accumulation)


def _round_up(x, m):
    return (x + m - 1) // m * m


PAD_BOT_IN = _round_up(LN_BOT[0], 8)     # 13 -> 16 (sublane-aligned first matmul)


# ------------------------------ kernel ------------------------------
def dlrm_kernel(dense_ref, ly_ref, *rest):
    """All activations are (features, batch_tile): batch maps to lanes."""
    out_ref = rest[-1]
    params = rest[:-1]
    bot_w = params[0:2 * N_BOT:2]
    bot_b = params[1:2 * N_BOT:2]
    top_w = params[2 * N_BOT:2 * (N_BOT + N_TOP):2]
    top_b = params[2 * N_BOT + 1:2 * (N_BOT + N_TOP):2]

    # ---- bottom MLP:  h = act(W @ h + b)  (W in PyTorch (out, in) layout) ----
    x = dense_ref[...]                                    # (PAD_BOT_IN, TB) f32
    for i in range(N_BOT):
        y = jnp.dot(bot_w[i][...], x.astype(COMPUTE_DTYPE),
                    preferred_element_type=jnp.float32) + bot_b[i][...]
        x = jax.nn.sigmoid(y) if i == SIGMOID_BOT else jnp.maximum(y, 0.0)
    # x: (EMB_DIM, TB) f32

    # ---- 'dot' interaction folded into the first top-MLP matmul ----
    # zE = [x ; feats[i_p]*feats[j_p] for each pair p]  -> (D*(1+NUM_INT), TB)
    # top layer 0 weight was pre-fused as [W0_x | repeat(W0_int, D)] so
    # W0_fused @ zE == W0_x @ x + W0_int @ Zflat   (reduction on the MXU)
    ly = ly_ref[...]                                      # (NUM_SPARSE*D, TB)
    feats = [x] + [ly[k * EMB_DIM:(k + 1) * EMB_DIM, :] for k in range(NUM_SPARSE)]
    zE = jnp.concatenate([x] + [feats[i] * feats[j] for (i, j) in _PAIRS], axis=0)

    # ---- top MLP (sigmoid on final layer) ----
    z = zE
    for i in range(N_TOP):
        y = jnp.dot(top_w[i][...], z.astype(COMPUTE_DTYPE),
                    preferred_element_type=jnp.float32) + top_b[i][...]
        z = jax.nn.sigmoid(y) if i == SIGMOID_TOP else jnp.maximum(y, 0.0)

    if 0.0 < LOSS_THRESHOLD < 1.0:
        z = jnp.clip(z, LOSS_THRESHOLD, 1.0 - LOSS_THRESHOLD)
    out_ref[...] = z                                      # (1, TB) lane-dense store


# ------------------------------ wrapper ------------------------------
def dlrm_forward(dense_x, ly_packed, bot_params, top_params):
    """dense_x: (B, LN_BOT[0]) f32;  ly_packed: (B, NUM_SPARSE*EMB_DIM) f32.
    bot_params/top_params: lists of (W (out,in), b (out,)) in PyTorch layout.
    Returns (B, 1) f32 — same semantics as DLRM_Net.forward."""
    B = dense_x.shape[0]
    Bp = _round_up(B, TB)
    grid = (Bp // TB,)

    # batch-in-lanes layout: (features, batch), zero-pad feature and batch tails
    dense_T = jnp.pad(dense_x.T.astype(jnp.float32),
                      ((0, PAD_BOT_IN - LN_BOT[0]), (0, Bp - B)))
    ly_T = jnp.pad(ly_packed.T.astype(jnp.float32), ((0, 0), (0, Bp - B)))

    def prep(W, b, pad_in=None):
        if pad_in is not None and W.shape[1] < pad_in:
            W = jnp.pad(W, ((0, 0), (0, pad_in - W.shape[1])))
        return W.astype(COMPUTE_DTYPE), b.reshape(-1, 1).astype(jnp.float32)

    wb = []
    for i, (W, b) in enumerate(bot_params):
        wb.append(prep(W, b, PAD_BOT_IN if i == 0 else None))

    # Fuse the interaction concat into the first top-layer weight:
    #   W0 @ [x ; Zflat] == [W0_x | repeat(W0_int, EMB_DIM, axis=1)] @ [x ; E]
    W0, b0 = top_params[0]
    W0_fused = jnp.concatenate(
        [W0[:, :EMB_DIM], jnp.repeat(W0[:, EMB_DIM:], EMB_DIM, axis=1)], axis=1)
    wb.append(prep(W0_fused, b0))
    for (W, b) in top_params[1:]:
        wb.append(prep(W, b))

    args = [dense_T, ly_T]
    in_specs = [
        pl.BlockSpec((PAD_BOT_IN, TB), lambda i: (0, i)),
        pl.BlockSpec((NUM_SPARSE * EMB_DIM, TB), lambda i: (0, i)),
    ]
    for (W, b) in wb:
        args += [W, b]
        # constant block index -> weights/biases stay VMEM-resident across steps
        in_specs += [pl.BlockSpec(W.shape, lambda i: (0, 0)),
                     pl.BlockSpec(b.shape, lambda i: (0, 0))]

    out_T = pl.pallas_call(
        dlrm_kernel,
        out_shape=jax.ShapeDtypeStruct((LN_TOP[-1], Bp), jnp.float32),
        grid=grid,
        in_specs=in_specs,
        out_specs=pl.BlockSpec((LN_TOP[-1], TB), lambda i: (0, i)),
        compiler_params=pltpu.CompilerParams(
            dimension_semantics=("parallel",)),
    )(*args)
    return out_T[:, :B].T                                  # (B, 1)


# ---------------- deterministic parameter init (mirrors create_mlp) ----------------
def make_mlp_params(key, ln):
    """Returns list of (W (m,n), b (m,)) in PyTorch layout."""
    params = []
    for i in range(len(ln) - 1):
        n, m = int(ln[i]), int(ln[i + 1])
        key, kw, kb = jax.random.split(key, 3)
        W = jax.random.normal(kw, (m, n), dtype=jnp.float32) * np.sqrt(2.0 / (m + n))
        b = jax.random.normal(kb, (m,), dtype=jnp.float32) * np.sqrt(1.0 / m)
        params.append((W, b))
    return key, params


def ref_forward(dense_x, ly_list, bot_params, top_params):
    """Pure-JAX f32 reference matching the PyTorch forward semantics."""
    x = dense_x
    for i, (W, b) in enumerate(bot_params):
        y = x @ W.T + b
        x = jax.nn.sigmoid(y) if i == SIGMOID_BOT else jnp.maximum(y, 0.0)
    T = jnp.stack([x] + ly_list, axis=1)              # (B, NUM_FEAT, EMB_DIM)
    Z = jnp.einsum('bid,bjd->bij', T, T)              # bmm(T, T^T)
    Zflat = jnp.stack([Z[:, i, j] for (i, j) in _PAIRS], axis=1)
    z = jnp.concatenate([x, Zflat], axis=1)
    for i, (W, b) in enumerate(top_params):
        y = z @ W.T + b
        z = jax.nn.sigmoid(y) if i == SIGMOID_TOP else jnp.maximum(y, 0.0)
    if 0.0 < LOSS_THRESHOLD < 1.0:
        z = jnp.clip(z, LOSS_THRESHOLD, 1.0 - LOSS_THRESHOLD)
    return z


if __name__ == "__main__":
    key = jax.random.PRNGKey(0)

    # parameters
    key, bot_params = make_mlp_params(key, LN_BOT)
    key, top_params = make_mlp_params(key, LN_TOP)

    # inputs: dense features + sparse embedding outputs ly
    key, kd, kl = jax.random.split(key, 3)
    dense_x = jax.random.normal(kd, (BATCH, LN_BOT[0]), dtype=jnp.float32)
    ly_list = [
        jax.random.normal(k, (BATCH, EMB_DIM), dtype=jnp.float32)
        for k in jax.random.split(kl, NUM_SPARSE)
    ]
    ly_packed = jnp.concatenate(ly_list, axis=1)       # (B, NUM_SPARSE * EMB_DIM)

    out = dlrm_forward(dense_x, ly_packed, bot_params, top_params)
    out = jax.block_until_ready(out)

    expected = ref_forward(dense_x, ly_list, bot_params, top_params)
    # bf16 matmul operands (f32 accumulation) -> looser tolerance than pure f32
    np.testing.assert_allclose(np.asarray(out), np.asarray(expected),
                               rtol=3e-2, atol=3e-2)
    print("KERNEL_OK")
</pallas_src>

<mosaic_0001>
module attributes {stable_mosaic.version = 11 : i64} {
  func.func @dlrm_kernel(%arg0: i32, %arg1: memref<16x256xf32, #tpu.memory_space<vmem>>, %arg2: memref<48x256xf32, #tpu.memory_space<vmem>>, %arg3: memref<64x16xbf16, #tpu.memory_space<vmem>>, %arg4: memref<64x1xf32, #tpu.memory_space<vmem>>, %arg5: memref<32x64xbf16, #tpu.memory_space<vmem>>, %arg6: memref<32x1xf32, #tpu.memory_space<vmem>>, %arg7: memref<16x32xbf16, #tpu.memory_space<vmem>>, %arg8: memref<16x1xf32, #tpu.memory_space<vmem>>, %arg9: memref<32x112xbf16, #tpu.memory_space<vmem>>, %arg10: memref<32x1xf32, #tpu.memory_space<vmem>>, %arg11: memref<16x32xbf16, #tpu.memory_space<vmem>>, %arg12: memref<16x1xf32, #tpu.memory_space<vmem>>, %arg13: memref<1x16xbf16, #tpu.memory_space<vmem>>, %arg14: memref<1x1xf32, #tpu.memory_space<vmem>>, %arg15: memref<1x256xf32, #tpu.memory_space<vmem>>) attributes {dimension_semantics = [#tpu.dimension_semantics<parallel>], iteration_bounds = array<i64: 4>, scalar_prefetch = 0 : i64, scratch_operands = 0 : i64, tpu.core_type = #tpu.core_type<tc>, window_params = [{transform_indices = @transform_0, window_bounds = array<i64: 16, 256>}, {transform_indices = @transform_1, window_bounds = array<i64: 48, 256>}, {pipeline_mode = #tpu.pipeline_mode<synchronous>, transform_indices = @transform_2, window_bounds = array<i64: 64, 16>}, {pipeline_mode = #tpu.pipeline_mode<synchronous>, transform_indices = @transform_3, window_bounds = array<i64: 64, 1>}, {pipeline_mode = #tpu.pipeline_mode<synchronous>, transform_indices = @transform_4, window_bounds = array<i64: 32, 64>}, {pipeline_mode = #tpu.pipeline_mode<synchronous>, transform_indices = @transform_5, window_bounds = array<i64: 32, 1>}, {pipeline_mode = #tpu.pipeline_mode<synchronous>, transform_indices = @transform_6, window_bounds = array<i64: 16, 32>}, {pipeline_mode = #tpu.pipeline_mode<synchronous>, transform_indices = @transform_7, window_bounds = array<i64: 16, 1>}, {pipeline_mode = #tpu.pipeline_mode<synchronous>, transform_indices = @transform_8, window_bounds = array<i64: 32, 112>}, {pipeline_mode = #tpu.pipeline_mode<synchronous>, transform_indices = @transform_9, window_bounds = array<i64: 32, 1>}, {pipeline_mode = #tpu.pipeline_mode<synchronous>, transform_indices = @transform_10, window_bounds = array<i64: 16, 32>}, {pipeline_mode = #tpu.pipeline_mode<synchronous>, transform_indices = @transform_11, window_bounds = array<i64: 16, 1>}, {pipeline_mode = #tpu.pipeline_mode<synchronous>, transform_indices = @transform_12, window_bounds = array<i64: 1, 16>}, {pipeline_mode = #tpu.pipeline_mode<synchronous>, transform_indices = @transform_13, window_bounds = array<i64: 1, 1>}, {transform_indices = @transform_14, window_bounds = array<i64: 1, 256>}]} {
    %c0 = arith.constant 0 : index
    %c0_0 = arith.constant 0 : index
    %0 = vector.load %arg1[%c0, %c0_0] : memref<16x256xf32, #tpu.memory_space<vmem>>, vector<16x256xf32>
    %c0_1 = arith.constant 0 : index
    %c0_2 = arith.constant 0 : index
    %1 = vector.load %arg3[%c0_1, %c0_2] : memref<64x16xbf16, #tpu.memory_space<vmem>>, vector<64x16xbf16>
    %2 = arith.truncf %0 : vector<16x256xf32> to vector<16x256xbf16>
    %cst = arith.constant dense<0.000000e+00> : vector<64x256xf32>
    %3 = tpu.matmul %1, %2, %cst {dimension_numbers = #tpu.dot_dimension_numbers<[1], [0], [0], [1], [0, 0, 1, 1], [], []>} : vector<64x16xbf16>, vector<16x256xbf16>, vector<64x256xf32> -> vector<64x256xf32>
    %c0_3 = arith.constant 0 : index
    %c0_4 = arith.constant 0 : index
    %4 = vector.load %arg4[%c0_3, %c0_4] : memref<64x1xf32, #tpu.memory_space<vmem>>, vector<64x1xf32>
    %5 = vector.broadcast %4 : vector<64x1xf32> to vector<64x256xf32>
    %6 = arith.addf %3, %5 : vector<64x256xf32>
    %cst_5 = arith.constant 0.000000e+00 : f32
    %7 = vector.broadcast %cst_5 : f32 to vector<64x256xf32>
    %8 = arith.maximumf %6, %7 : vector<64x256xf32>
    %c0_6 = arith.constant 0 : index
    %c0_7 = arith.constant 0 : index
    %9 = vector.load %arg5[%c0_6, %c0_7] : memref<32x64xbf16, #tpu.memory_space<vmem>>, vector<32x64xbf16>
    %10 = arith.truncf %8 : vector<64x256xf32> to vector<64x256xbf16>
    %cst_8 = arith.constant dense<0.000000e+00> : vector<32x256xf32>
    %11 = tpu.matmul %9, %10, %cst_8 {dimension_numbers = #tpu.dot_dimension_numbers<[1], [0], [0], [1], [0, 0, 1, 1], [], []>} : vector<32x64xbf16>, vector<64x256xbf16>, vector<32x256xf32> -> vector<32x256xf32>
    %c0_9 = arith.constant 0 : index
    %c0_10 = arith.constant 0 : index
    %12 = vector.load %arg6[%c0_9, %c0_10] : memref<32x1xf32, #tpu.memory_space<vmem>>, vector<32x1xf32>
    %13 = vector.broadcast %12 : vector<32x1xf32> to vector<32x256xf32>
    %14 = arith.addf %11, %13 : vector<32x256xf32>
    %cst_11 = arith.constant 0.000000e+00 : f32
    %15 = vector.broadcast %cst_11 : f32 to vector<32x256xf32>
    %16 = arith.maximumf %14, %15 : vector<32x256xf32>
    %c0_12 = arith.constant 0 : index
    %c0_13 = arith.constant 0 : index
    %17 = vector.load %arg7[%c0_12, %c0_13] : memref<16x32xbf16, #tpu.memory_space<vmem>>, vector<16x32xbf16>
    %18 = arith.truncf %16 : vector<32x256xf32> to vector<32x256xbf16>
    %cst_14 = arith.constant dense<0.000000e+00> : vector<16x256xf32>
    %19 = tpu.matmul %17, %18, %cst_14 {dimension_numbers = #tpu.dot_dimension_numbers<[1], [0], [0], [1], [0, 0, 1, 1], [], []>} : vector<16x32xbf16>, vector<32x256xbf16>, vector<16x256xf32> -> vector<16x256xf32>
    %c0_15 = arith.constant 0 : index
    %c0_16 = arith.constant 0 : index
    %20 = vector.load %arg8[%c0_15, %c0_16] : memref<16x1xf32, #tpu.memory_space<vmem>>, vector<16x1xf32>
    %21 = vector.broadcast %20 : vector<16x1xf32> to vector<16x256xf32>
    %22 = arith.addf %19, %21 : vector<16x256xf32>
    %cst_17 = arith.constant 0.000000e+00 : f32
    %23 = vector.broadcast %cst_17 : f32 to vector<16x256xf32>
    %24 = arith.maximumf %22, %23 : vector<16x256xf32>
    %c0_18 = arith.constant 0 : index
    %c0_19 = arith.constant 0 : index
    %25 = vector.load %arg2[%c0_18, %c0_19] : memref<48x256xf32, #tpu.memory_space<vmem>>, vector<48x256xf32>
    %26 = vector.extract_strided_slice %25 {offsets = [0, 0], sizes = [16, 256], strides = [1, 1]} : vector<48x256xf32> to vector<16x256xf32>
    %27 = vector.extract_strided_slice %25 {offsets = [16, 0], sizes = [16, 256], strides = [1, 1]} : vector<48x256xf32> to vector<16x256xf32>
    %28 = vector.extract_strided_slice %25 {offsets = [32, 0], sizes = [16, 256], strides = [1, 1]} : vector<48x256xf32> to vector<16x256xf32>
    %29 = arith.mulf %26, %24 : vector<16x256xf32>
    %30 = arith.mulf %27, %24 : vector<16x256xf32>
    %31 = arith.mulf %27, %26 : vector<16x256xf32>
    %32 = arith.mulf %28, %24 : vector<16x256xf32>
    %33 = arith.mulf %28, %26 : vector<16x256xf32>
    %34 = arith.mulf %28, %27 : vector<16x256xf32>
    %35 = tpu.concatenate %24, %29, %30, %31, %32, %33, %34 in 0 : vector<16x256xf32>, vector<16x256xf32>, vector<16x256xf32>, vector<16x256xf32>, vector<16x256xf32>, vector<16x256xf32>, vector<16x256xf32> -> vector<112x256xf32>
    %c0_20 = arith.constant 0 : index
    %c0_21 = arith.constant 0 : index
    %36 = vector.load %arg9[%c0_20, %c0_21] : memref<32x112xbf16, #tpu.memory_space<vmem>>, vector<32x112xbf16>
    %37 = arith.truncf %35 : vector<112x256xf32> to vector<112x256xbf16>
    %cst_22 = arith.constant dense<0.000000e+00> : vector<32x256xf32>
    %38 = tpu.matmul %36, %37, %cst_22 {dimension_numbers = #tpu.dot_dimension_numbers<[1], [0], [0], [1], [0, 0, 1, 1], [], []>} : vector<32x112xbf16>, vector<112x256xbf16>, vector<32x256xf32> -> vector<32x256xf32>
    %c0_23 = arith.constant 0 : index
    %c0_24 = arith.constant 0 : index
    %39 = vector.load %arg10[%c0_23, %c0_24] : memref<32x1xf32, #tpu.memory_space<vmem>>, vector<32x1xf32>
    %40 = vector.broadcast %39 : vector<32x1xf32> to vector<32x256xf32>
    %41 = arith.addf %38, %40 : vector<32x256xf32>
    %cst_25 = arith.constant 0.000000e+00 : f32
    %42 = vector.broadcast %cst_25 : f32 to vector<32x256xf32>
    %43 = arith.maximumf %41, %42 : vector<32x256xf32>
    %c0_26 = arith.constant 0 : index
    %c0_27 = arith.constant 0 : index
    %44 = vector.load %arg11[%c0_26, %c0_27] : memref<16x32xbf16, #tpu.memory_space<vmem>>, vector<16x32xbf16>
    %45 = arith.truncf %43 : vector<32x256xf32> to vector<32x256xbf16>
    %cst_28 = arith.constant dense<0.000000e+00> : vector<16x256xf32>
    %46 = tpu.matmul %44, %45, %cst_28 {dimension_numbers = #tpu.dot_dimension_numbers<[1], [0], [0], [1], [0, 0, 1, 1], [], []>} : vector<16x32xbf16>, vector<32x256xbf16>, vector<16x256xf32> -> vector<16x256xf32>
    %c0_29 = arith.constant 0 : index
    %c0_30 = arith.constant 0 : index
    %47 = vector.load %arg12[%c0_29, %c0_30] : memref<16x1xf32, #tpu.memory_space<vmem>>, vector<16x1xf32>
    %48 = vector.broadcast %47 : vector<16x1xf32> to vector<16x256xf32>
    %49 = arith.addf %46, %48 : vector<16x256xf32>
    %cst_31 = arith.constant 0.000000e+00 : f32
    %50 = vector.broadcast %cst_31 : f32 to vector<16x256xf32>
    %51 = arith.maximumf %49, %50 : vector<16x256xf32>
    %c0_32 = arith.constant 0 : index
    %c0_33 = arith.constant 0 : index
    %52 = vector.load %arg13[%c0_32, %c0_33] : memref<1x16xbf16, #tpu.memory_space<vmem>>, vector<1x16xbf16>
    %53 = arith.truncf %51 : vector<16x256xf32> to vector<16x256xbf16>
    %cst_34 = arith.constant dense<0.000000e+00> : vector<1x256xf32>
    %54 = tpu.matmul %52, %53, %cst_34 {dimension_numbers = #tpu.dot_dimension_numbers<[1], [0], [0], [1], [0, 0, 1, 1], [], []>} : vector<1x16xbf16>, vector<16x256xbf16>, vector<1x256xf32> -> vector<1x256xf32>
    %c0_35 = arith.constant 0 : index
    %c0_36 = arith.constant 0 : index
    %55 = vector.load %arg14[%c0_35, %c0_36] : memref<1x1xf32, #tpu.memory_space<vmem>>, vector<1x1xf32>
    %56 = vector.broadcast %55 : vector<1x1xf32> to vector<1x256xf32>
    %57 = arith.addf %54, %56 : vector<1x256xf32>
    %58 = arith.negf %57 : vector<1x256xf32>
    %59 = math.exp %58 : vector<1x256xf32>
    %cst_37 = arith.constant 1.000000e+00 : f32
    %60 = vector.broadcast %cst_37 : f32 to vector<1x256xf32>
    %61 = arith.addf %60, %59 : vector<1x256xf32>
    %62 = arith.divf %60, %61 : vector<1x256xf32>
    %c0_38 = arith.constant 0 : index
    %c0_39 = arith.constant 0 : index
    %63 = vector.load %arg15[%c0_38, %c0_39] : memref<1x256xf32, #tpu.memory_space<vmem>>, vector<1x256xf32>
    tpu.vector_store %arg15[%c0_38, %c0_39], %62 {strides = array<i32>} : memref<1x256xf32, #tpu.memory_space<vmem>>, vector<1x256xf32>,
    return
  }
  func.func @transform_0(%arg0: i32) -> (i32, i32) {
    %c0_i32 = arith.constant 0 : i32
    %c0_i32_0 = arith.constant 0 : i32
    return %c0_i32, %arg0 : i32, i32
  }
  func.func @transform_1(%arg0: i32) -> (i32, i32) {
    %c0_i32 = arith.constant 0 : i32
    %c0_i32_0 = arith.constant 0 : i32
    return %c0_i32, %arg0 : i32, i32
  }
  func.func @transform_2(%arg0: i32) -> (i32, i32) {
    %c0_i32 = arith.constant 0 : i32
    %c0_i32_0 = arith.constant 0 : i32
    %c0_i32_1 = arith.constant 0 : i32
    return %c0_i32, %c0_i32_0 : i32, i32
  }
  func.func @transform_3(%arg0: i32) -> (i32, i32) {
    %c0_i32 = arith.constant 0 : i32
    %c0_i32_0 = arith.constant 0 : i32
    %c0_i32_1 = arith.constant 0 : i32
    return %c0_i32, %c0_i32_0 : i32, i32
  }
  func.func @transform_4(%arg0: i32) -> (i32, i32) {
    %c0_i32 = arith.constant 0 : i32
    %c0_i32_0 = arith.constant 0 : i32
    %c0_i32_1 = arith.constant 0 : i32
    return %c0_i32, %c0_i32_0 : i32, i32
  }
  func.func @transform_5(%arg0: i32) -> (i32, i32) {
    %c0_i32 = arith.constant 0 : i32
    %c0_i32_0 = arith.constant 0 : i32
    %c0_i32_1 = arith.constant 0 : i32
    return %c0_i32, %c0_i32_0 : i32, i32
  }
  func.func @transform_6(%arg0: i32) -> (i32, i32) {
    %c0_i32 = arith.constant 0 : i32
    %c0_i32_0 = arith.constant 0 : i32
    %c0_i32_1 = arith.constant 0 : i32
    return %c0_i32, %c0_i32_0 : i32, i32
  }
  func.func @transform_7(%arg0: i32) -> (i32, i32) {
    %c0_i32 = arith.constant 0 : i32
    %c0_i32_0 = arith.constant 0 : i32
    %c0_i32_1 = arith.constant 0 : i32
    return %c0_i32, %c0_i32_0 : i32, i32
  }
  func.func @transform_8(%arg0: i32) -> (i32, i32) {
    %c0_i32 = arith.constant 0 : i32
    %c0_i32_0 = arith.constant 0 : i32
    %c0_i32_1 = arith.constant 0 : i32
    return %c0_i32, %c0_i32_0 : i32, i32
  }
  func.func @transform_9(%arg0: i32) -> (i32, i32) {
    %c0_i32 = arith.constant 0 : i32
    %c0_i32_0 = arith.constant 0 : i32
    %c0_i32_1 = arith.constant 0 : i32
    return %c0_i32, %c0_i32_0 : i32, i32
  }
  func.func @transform_10(%arg0: i32) -> (i32, i32) {
    %c0_i32 = arith.constant 0 : i32
    %c0_i32_0 = arith.constant 0 : i32
    %c0_i32_1 = arith.constant 0 : i32
    return %c0_i32, %c0_i32_0 : i32, i32
  }
  func.func @transform_11(%arg0: i32) -> (i32, i32) {
    %c0_i32 = arith.constant 0 : i32
    %c0_i32_0 = arith.constant 0 : i32
    %c0_i32_1 = arith.constant 0 : i32
    return %c0_i32, %c0_i32_0 : i32, i32
  }
  func.func @transform_12(%arg0: i32) -> (i32, i32) {
    %c0_i32 = arith.constant 0 : i32
    %c0_i32_0 = arith.constant 0 : i32
    %c0_i32_1 = arith.constant 0 : i32
    return %c0_i32, %c0_i32_0 : i32, i32
  }
  func.func @transform_13(%arg0: i32) -> (i32, i32) {
    %c0_i32 = arith.constant 0 : i32
    %c0_i32_0 = arith.constant 0 : i32
    %c0_i32_1 = arith.constant 0 : i32
    return %c0_i32, %c0_i32_0 : i32, i32
  }
  func.func @transform_14(%arg0: i32) -> (i32, i32) {
    %c0_i32 = arith.constant 0 : i32
    %c0_i32_0 = arith.constant 0 : i32
    return %c0_i32, %arg0 : i32, i32
  }
}

</mosaic_0001>

<bundles_post_ra>
// kernel: tpu_custom_call.1
= control target key start
LH: loop header
LB: loop body
LE: loop exit
PB: predicated region body
PF: predicated region fallthrough
CT: control target
= control target key end

     0   :  { %s1946_s0 = inlined_call_operand.hbm [shape: f32[16,1024], index: 0, kind: input, shape index: {}]   ;;  %s1947_s1 = inlined_call_operand.hbm [shape: f32[48,1024], index: 1, kind: input, shape index: {}]   ;;  %s1948_s2 = inlined_call_operand.vmem [shape: bf16[64,16], index: 2, kind: input, shape index: {}]   ;;  %s1949_s3 = inlined_call_operand.vmem [shape: f32[64,1], index: 3, kind: input, shape index: {}]   ;;  %s1950_s4 = inlined_call_operand.vmem [shape: bf16[32,64], index: 4, kind: input, shape index: {}]   ;;  %s1951_s5 = inlined_call_operand.vmem [shape: f32[32,1], index: 5, kind: input, shape index: {}]   ;;  %s1952_s6 = inlined_call_operand.vmem [shape: bf16[16,32], index: 6, kind: input, shape index: {}]   ;;  %s1953_s7 = inlined_call_operand.vmem [shape: f32[16,1], index: 7, kind: input, shape index: {}]   ;;  %s1954_s8 = inlined_call_operand.vmem [shape: bf16[32,112], index: 8, kind: input, shape index: {}]   ;;  %s1955_s9 = inlined_call_operand.vmem [shape: f32[32,1], index: 9, kind: input, shape index: {}]   ;;  %s1956_s10 = inlined_call_operand.vmem [shape: bf16[16,32], index: 10, kind: input, shape index: {}]   ;;  %s1957_s11 = inlined_call_operand.vmem [shape: f32[16,1], index: 11, kind: input, shape index: {}]   ;;  %s1958_s12 = inlined_call_operand.vmem [shape: bf16[1,16], index: 12, kind: input, shape index: {}]   ;;  %s1959_s13 = inlined_call_operand.<no memory space> [shape: f32[1,1], index: 13, kind: input, shape index: {}]   ;;  %s1960_s14 = inlined_call_operand.hbm [shape: f32[1,1024], index: 14, kind: output, shape index: {}]  }
   0x1   :  { %1972 = sst [smem:[#allocation19_spill]] %s1946_s0  ;;  %v19_v0 = vstv %s1959_s13 }
   0x2   :  { %1973 = sst [smem:[#allocation20_spill]] %s1954_s8  ;;  %20 = vst [vmem:[#allocation2] sm:$0x1] %v19_v0 }
   0x3   :  { %1974 = sst [smem:[#allocation21_spill]] %s1956_s10 }
   0x4   :  { %1975 = sst [smem:[#allocation22_spill]] %s1958_s12 }
   0x5   :  { %1976 = sst [smem:[#allocation23_spill]] %s1960_s14 }
   0x6   :  { %21 = vsyncpa [#allocation4], 0 }
   0x7   :  { %23 = vsyncpa [#allocation4 + $0x1], 0 }
   0x8   :  { %24 = vsyncpa [#allocation7], 0 }
   0x9   :  { %26 = vsyncpa [#allocation7 + $0x1], 0 }
   0xa   :  { %27 = vsyncpa [#allocation5], 0 }
   0xb   :  { %29 = vsyncpa [#allocation5 + $0x1], 0  ;;  %s1632_s15 = smov 0   ;;  %s1634_s16 = smov 0  }
   0xc   :  { %s1636_s17 = smov 0   ;;  %s1638_s18 = smov 0  }
   0xd LB: > { %1977 = sst [smem:[#allocation12_spill]] %s1536_s15  ;;  %s1653_s13 = sadd.s32 4294967295, %s1548_s18   ;;  %s1548_s18 = sphi %s1638_s18, %s2002_s18   ;;  %s1544_s17 = sphi %s1636_s17, %s2004_s17   ;;  %s1540_s16 = sphi %s1634_s16, %s2006_s16   ;;  %s1536_s15 = sphi %s1632_s15, %s2005_s15  }
   0xe   : > { %1978 = sst [smem:[#allocation13_spill]] %s1544_s17  ;;  %s1259_s19 = sadd.s32 4294967294, %s1548_s18  }
   0xf   : > { %1979 = sst [smem:[#allocation14_spill]] %s1653_s13  ;;  %s1657_s20 = sadd.s32 1, %s1548_s18  }
  0x10   : > { %1980 = sst [smem:[#allocation15_spill]] %s1657_s20  ;;  %s42_s21 = sadd.s32 1, %s1544_s17 }
  0x11   : > { %s39_s22 = ssub.s32 %s1548_s18, %s1657_s20  ;;  %p49_p0 = scmp.ne.s32.totalorder %s1544_s17, %s1540_s16 }
  0x12   : > { %p40_p1 = scmp.eq.s32.totalorder %s39_s22, 0  ;;  %p50_p2 = scmp.eq.s32.totalorder %s1548_s18, 0 }
  0x13   : > { %p55_p3 = scmp.ne.s32.totalorder %s1540_s16, %s1536_s15  ;;  %p56_p4 = scmp.eq.s32.totalorder %s1653_s13, 0 }
  0x14   : > { %s1669_s23 = scalar_select %p40_p1, %s1544_s17, %s42_s21  }
  0x15   : > { %p1671_p5 = por %p50_p2, %p49_p0  ;;  %p1675_p6 = por %p56_p4, %p55_p3 }
  0x16   : > { %1981 = sst [smem:[#allocation16_spill]] %s1669_s23  ;;  %p357_p7 = scmp.eq.s32.totalorder %s1653_s13, 3 }
  0x17   : > { %p363_p8 = scmp.eq.s32.totalorder %s1259_s19, 3  ;;  %p1369_p9 = scmp.lt.s32.totalorder %s1548_s18, 4 }
  0x18   : > { %p1681_p10 = por %p357_p7, %p49_p0  ;;  %s1690_s28 = sand.u32 1, %s1544_s17  }
  0x19   : > { %p1685_p11 = por %p363_p8, %p55_p3  ;;  %s1969_s29 = sshll.u32 %s1548_s18, 4 }
  0x1a   : > { %s1984_s26 = scalar_select %p1681_p10, 1, 0 }
  0x1b   : > { %s1986_s27 = scalar_select %p1685_p11, 1, 0 }
  0x1c   : > { %1985 = sst [smem:[#allocation17_spill]] %s1984_s26  ;;  %s1262_s30 = sshll.u32 %s1690_s28, 5 }
  0x1d   : > { %1987 = sst [smem:[#allocation18_spill]] %s1986_s27  ;;  %s423_s20 = scalar_lea.vmem [#allocation3], %s1262_s30 }
  0x1e   : > { %s1988_s0 = sld [smem:[#allocation19_spill]]  ;;  %s431_s15 = sshll.u32 %s423_s20, 4  ;;  %s432_s15 = int_to_ptr.vmem [resolvable:$true] %s431_s15 }
  0x1f   : > { %p1701_p12 = pnand %p1369_p9, %p1671_p5  ;;  %p1267_p13 = scmp.ge.s32.totalorder %s1548_s18, 1 }
  0x20   : > { %s420_s17 = scalar_lea.sflag [#allocation4], %s1690_s28 }
  0x21   : > { %p1422_p1 = pneg %p1701_p12 }
  0x24   : > { %s428_s19 = scalar_lea.hbm %s1988_s0, %s1969_s29  ;;  %s1425_s30 = scalar_lea.hbm %s1988_s0, 128 }
  0x25   : > { %s429_s23 = sshll.u32 %s428_s19, 4  ;;  %s430_s23 = int_to_ptr.hbm [resolvable:$true] %s429_s23 }
  0x26   : > { %s1418_s27 = sshra.s32 %s430_s23, 4  ;;  %s1419_s27 = int_to_ptr.hbm [resolvable:$true] %s1418_s27 }
  0x27   : > { %s1420_s14 = scalar_lea.hbm %s1419_s27, 32  ;;  %p1426_p4 = scmp.lt.s32.totalorder %s1419_s27, %s1988_s0 }
  0x28   : > { %p1421_p0 = scmp.ne.s32.totalorder %s1419_s27, %s1420_s14  ;;  %p1427_p5 = scmp.lt.s32.totalorder %s1425_s30, %s1420_s14 }
  0x2a   : > { %p1423_p2 = pnand %p1422_p1, %p1421_p0  ;;  %p1428_p7 = por %p1427_p5, %p1426_p4 }
  0x2c   : > { %p1424_p3 = pneg %p1423_p2 }
  0x2e   : > { %p1429_p8 = pnand %p1428_p7, %p1424_p3 }
  0x30   : > { %1432 = shalt.err (!%p1429_p8)
}
  0x31   : > { %s1550_s19 = smov 1024   ;;  %s1551_s29 = smov 256  }
  0x32   : > { %s1552_s13 = smov 16   ;;  %p461_p9 = scmp.lt.s32.totalorder %s1548_s18, 5 }
  0x33   : > { %1361 = dma.hbm_to_vmem [thread:$0]  (!%p1701_p12), %s430_s23, 512, %s432_s15, %s420_s17, %s1550_s19, %s1551_s29, %s1552_s13  }
  0x34   : > { %s1350_s27 = smul.u32 96, %s1690_s28  ;;  %s1990_s14 = sshll.u32 %s1548_s18, 4 }
  0x35   : > { %s450_s30 = scalar_lea.hbm %s1947_s1, %s1990_s14  ;;  %p1731_p0 = pnand %p1267_p13, %p461_p9 }
  0x36   : > { %s451_s22 = sshll.u32 %s450_s30, 4  ;;  %s445_s0 = scalar_lea.vmem [#allocation6], %s1350_s27  ;;  %s452_s22 = int_to_ptr.hbm [resolvable:$true] %s451_s22 }
  0x37   : > { %s453_s12 = sshll.u32 %s445_s0, 4  ;;  %s442_s10 = scalar_lea.sflag [#allocation7], %s1690_s28  ;;  %s454_s12 = int_to_ptr.vmem [resolvable:$true] %s453_s12 }
  0x38   : > { %s1448_s8 = sshra.s32 %s452_s22, 4  ;;  %s1455_s14 = scalar_lea.hbm %s1947_s1, 384  ;;  %s1449_s8 = int_to_ptr.hbm [resolvable:$true] %s1448_s8 }
  0x39   : > { %s1450_s15 = scalar_lea.hbm %s1449_s8, 96  ;;  %p1456_p13 = scmp.lt.s32.totalorder %s1449_s8, %s1947_s1 }
  0x3a   : > { %p1451_p2 = scmp.ne.s32.totalorder %s1449_s8, %s1450_s15  ;;  %p1457_p5 = scmp.lt.s32.totalorder %s1455_s14, %s1450_s15 }
  0x3c   : > { %p1453_p3 = pnand %p1451_p2, %p1422_p1  ;;  %p1458_p7 = por %p1457_p5, %p1456_p13 }
  0x3e   : > { %p1454_p4 = pneg %p1453_p3 }
  0x40   : > { %p1459_p8 = pnand %p1458_p7, %p1454_p4 }
  0x42   : > { %1462 = shalt.err (!%p1459_p8)
}
  0x43   : > { %1364 = dma.hbm_to_vmem [thread:$0]  (!%p1701_p12), %s452_s22, 1536, %s454_s12, %s442_s10, %s1550_s19, %s1551_s29, %s1552_s13  }
  0x44   : > { %465 = sbr.rel (%p1731_p0) target bundleno = 1105 (0x451), region = 76  ;;  %s1752_s0 = sand.u32 (!%p1731_p0), 1, %s1540_s16  }
  0x45   : > { %s1268_s28 = sshll.u32 (!%p1731_p0), %s1752_s0, 5  ;;  %s468_s8 = scalar_lea.sflag (!%p1731_p0), [#allocation4], %s1752_s0 }
  0x46   : > { %s471_s27 = scalar_lea.vmem (!%p1731_p0), [#allocation3], %s1268_s28 }
  0x49   : > { %1523 = dma.done.wait (%p1675_p6), %s468_s8, 512  }
  0x4a   : > { %1525 = vsyncadd (%p1675_p6), %s468_s8, 4294966784  ;;  %s1351_s10 = smul.u32 96, %s1752_s0  ;;  %s478_s12 = scalar_lea.sflag [#allocation7], %s1752_s0 }
  0x4c   : > { %s1762_s13 = scalar_lea.vmem [#allocation6], %s1351_s10 }
  0x4d   : > { %1527 = dma.done.wait (%p1675_p6), %s478_s12, 1536  }
  0x4e   : > { %1529 = vsyncadd (%p1675_p6), %s478_s12, 4294965760  ;;  %v1553_v1 = vmov 0   ;;  %v556_v2 = vld [vmem:[%s1949_s3 + $0x30] sm:$0xff]  ;;  %v536_v3 = vld [vmem:[%s471_s27] sm:$0xff]  ;;  %vm618_vm0 = vcmask 130048   ;;  %vm751_vm1 = vcmask 523264  }
  0x4f   : > { %1407 = vset.pattern.permute.xlu0 %v1553_v1  ;;  %1408 = vset.pattern.permute.xlu1 %v1553_v1  ;;  %v538_v4 = vld [vmem:[%s471_s27 + $0x10] sm:$0xff]  ;;  %v537_v6 = vld [vmem:[%s471_s27 + $0x8] sm:$0xff]  ;;  %v539_v7 = vld [vmem:[%s471_s27 + $0x18] sm:$0xff]  ;;  %vm827_vm2 = vcmask 261120   ;;  %s1992_s29 = sld [smem:[#allocation20_spill]]  ;;  %vm951_vm3 = vcmask 916480  }
  0x50   : > { %1409 = vset.pattern.permute.xlu2 %v1553_v1  ;;  %590 = vperm.xlu0 %1407, %v556_v2   ;;  %v548_v5 = vpack.c.bf16 %v538_v4, %v536_v3  ;;  %v549_v8 = vpack.c.bf16 %v539_v7, %v537_v6  ;;  %v1340_v9 = vld [vmem:[%s1948_s2] sm:$0xff]  ;;  %v557_v11 = vld [vmem:[%s1949_s3 + $0x38] sm:$0xff]  ;;  %v552_v12 = vld [vmem:[%s1949_s3 + $0x10] sm:$0xff]  ;;  %s1993_s22 = sld [smem:[#allocation21_spill]]  ;;  %s1269_s20 = sshll.u32 %s1752_s0, 1  ;;  %vm1142_vm11 = vcmask 1040384  }
  0x51   : > { %v554_v10 = vld [vmem:[%s1949_s3 + $0x20] sm:$0xff]  ;;  %v555_v13 = vld [vmem:[%s1949_s3 + $0x28] sm:$0xff]  ;;  %570 = vperm.xlu2 %1409, %v552_v12   ;;  %v720_v17 = vld [vmem:[%s1951_s5 + $0x18] sm:$0xff]  ;;  %s1994_s23 = sld [smem:[#allocation22_spill]]  ;;  %s531_s12 = scalar_lea.vmem [#allocation8], %s1269_s20 }
  0x52   : > { %638 = vmatpush.bf16.msra.mxu0 %v548_v5  ;;  %580 = vperm.xlu1 %1408, %v554_v10   ;;  %v550_v14 = vld [vmem:[%s1949_s3] sm:$0xff]  ;;  %v551_v15 = vld [vmem:[%s1949_s3 + $0x8] sm:$0xff]  ;;  %v553_v18 = vld [vmem:[%s1949_s3 + $0x18] sm:$0xff]  ;;  %s1995_s14 = sld [smem:[#allocation14_spill]]  ;;  %s1151_s30 = scalar_lea.sflag [#allocation5], %s1752_s0 }
  0x53   : > { %667 = vmatpush.bf16.msra.mxu1 %v549_v8  ;;  %v1341_v16 = vld [vmem:[%s1948_s2 + $0x8] sm:$0xff]  ;;  %v717_v19 = vld [vmem:[%s1951_s5] sm:$0xff]  ;;  %v719_v20 = vld [vmem:[%s1951_s5 + $0x10] sm:$0xff]  ;;  %s1996_s27 = sld [smem:[#allocation23_spill]] }
  0x54   : > { %v810_v21 = vld [vmem:[%s1953_s7] sm:$0xff]  ;;  %v811_v22 = vld [vmem:[%s1953_s7 + $0x8] sm:$0xff]  ;;  %v1342_v23 = vld [vmem:[%s1948_s2 + $0x10] sm:$0xff] }
  0x55   : > { %1286 = vmatmul.msk.bf16.vlgmr.msra.gmra.mxu0 %vm618_vm0, %v1340_v9  ;;  %v718_v24 = vld [vmem:[%s1951_s5 + $0x8] sm:$0xff]  ;;  %v920_v25 = vld [vmem:[%s1955_s9 + $0x18] sm:$0xff]  ;;  %v917_v26 = vld [vmem:[%s1955_s9] sm:$0xff] }
  0x56   : > { %1290 = vmatmul.msk.bf16.vlgmr.msra.gmra.mxu1 %vm618_vm0, %v1340_v9  ;;  %v919_v27 = vld [vmem:[%s1955_s9 + $0x10] sm:$0xff]  ;;  %v1010_v28 = vld [vmem:[%s1957_s11] sm:$0xff]  ;;  %v1011_v29 = vld [vmem:[%s1957_s11 + $0x8] sm:$0xff] }
  0x57   : > { %v1343_v30 = vld [vmem:[%s1948_s2 + $0x18] sm:$0xff]  ;;  %v918_v31 = vld [vmem:[%s1955_s9 + $0x8] sm:$0xff]  ;;  %v1065_v32 = vld [vmem:[#allocation2] sm:$0x1] }
  0x58   : > { %595 = vperm.xlu0 %1407, %v557_v11   ;;  %s1335_s24 = sshll.u32 %s1995_s14, 1 }
  0x59   : > { %575 = vperm.xlu2 %1409, %v553_v18   ;;  %s1161_s10 = scalar_lea.hbm %s1996_s27, %s1335_s24  ;;  %s1498_s17 = scalar_lea.hbm %s1996_s27, 8 }
  0x5a   : > { %585 = vperm.xlu1 %1408, %v555_v13   ;;  %s1165_s26 = sshll.u32 %s1161_s10, 4  ;;  %s1166_s26 = int_to_ptr.hbm [resolvable:$true] %s1165_s26 }
  0x5b   : > { %s1492_s25 = sshra.s32 %s1166_s26, 4  ;;  %s1493_s25 = int_to_ptr.hbm [resolvable:$true] %s1492_s25 }
  0x5c   : > { %s1494_s21 = scalar_lea.hbm %s1493_s25, 2  ;;  %p1499_p9 = scmp.lt.s32.totalorder %s1493_s25, %s1996_s27 }
  0x5d   : > { %p1495_p6 = scmp.ne.s32.totalorder %s1493_s25, %s1494_s21  ;;  %p1500_p0 = scmp.lt.s32.totalorder %s1498_s17, %s1494_s21 }
  0x5f   : > { %p1496_p12 = pnand %p1495_p6, %p1681_p10  ;;  %p1501_p2 = por %p1500_p0, %p1499_p9 }
  0x60   : > { %560 = vperm.xlu0 %1407, %v550_v14  }
  0x61   : > { %733 = vperm.xlu2 %1409, %v719_v20   ;;  %p1497_p1 = pneg %p1496_p12 }
  0x62   : > { %565 = vperm.xlu1 %1408, %v551_v15  }
  0x63   : > { %p1502_p3 = pnand %p1501_p2, %p1497_p1 }
  0x65   : > { %1287 = vmatmul.msk.bf16.gmra.mxu0 %vm618_vm0, %v1341_v16 }
  0x66   : > { %1291 = vmatmul.msk.bf16.gmra.mxu1 %vm618_vm0, %v1341_v16 }
  0x68   : > { %738 = vperm.xlu0 %1407, %v720_v17  }
  0x69   : > { %728 = vperm.xlu2 %1409, %v718_v24  }
  0x6a   : > { %723 = vperm.xlu1 %1408, %v717_v19  }
  0x70   : > { %814 = vperm.xlu0 %1407, %v810_v21  }
  0x71   : > { %933 = vperm.xlu2 %1409, %v919_v27  }
  0x72   : > { %819 = vperm.xlu1 %1408, %v811_v22  }
  0x75   : > { %1288 = vmatmul.msk.bf16.gmra.mxu0 %vm618_vm0, %v1342_v23 }
  0x76   : > { %1292 = vmatmul.msk.bf16.gmra.mxu1 %vm618_vm0, %v1342_v23 }
  0x78   : > { %938 = vperm.xlu0 %1407, %v920_v25  }
  0x79   : > { %928 = vperm.xlu2 %1409, %v918_v31  }
  0x7a   : > { %923 = vperm.xlu1 %1408, %v917_v26  }
  0x80   : > { %1014 = vperm.xlu0 %1407, %v1010_v28  }
  0x81   : > { %1068 = vperm.xlu2 %1409, %v1065_v32  }
  0x82   : > { %1019 = vperm.xlu1 %1408, %v1011_v29  }
  0x85   : > { %1289 = vmatmul.msk.bf16.gmra.mxu0 %vm618_vm0, %v1343_v30 }
  0x86   : > { %1293 = vmatmul.msk.bf16.gmra.mxu1 %vm618_vm0, %v1343_v30 }
  0xab   : > { %v571_v49 = vpop.permute.xlu2 %570 }
  0xb3   : > { %v576_v63 = vpop.permute.xlu2 %575 }
  0xc2   : > { %v591_v46 = vpop.permute.xlu0 %590 }
  0xc4   : > { %v581_v45 = vpop.permute.xlu1 %580 }
  0xca   : > { %v596_v51 = vpop.permute.xlu0 %595 }
  0xcc   : > { %v586_v50 = vpop.permute.xlu1 %585 }
  0xd2   : > { %v640_v33 = vpop.f32.mrf.mxu0  ;;  %v561_v14 = vpop.permute.xlu0 %560 }
  0xd3   : > { %v669_v34 = vpop.f32.mrf.mxu1  ;;  %v641_v21 = vadd.f32 %v640_v33, %v561_v14  ;;  %v1344_v33 = vld [vmem:[%s1950_s4] sm:$0xff] }
  0xd4   : > { %v566_v6 = vpop.permute.xlu1 %565  ;;  %v670_v23 = vadd.f32 %v669_v34, %v561_v14  ;;  %v1345_v34 = vld [vmem:[%s1950_s4 + $0x8] sm:$0xff]  ;;  %v873_v14 = vld [vmem:[%s1762_s13 + $0x50] sm:$0xff] }
  0xd5   : > { %v689_v29 = vmax.f32 %v641_v21, 0.0  ;;  %v865_v21 = vld [vmem:[%s1762_s13 + $0x10] sm:$0xff] }
  0xd6   : > { %v690_v30 = vmax.f32 %v670_v23, 0.0 }
  0xda   : > { %v642_v35 = vpop.f32.mrf.mxu0 }
  0xdb   : > { %v671_v36 = vpop.f32.mrf.mxu1  ;;  %v643_v15 = vadd.f32 %v642_v35, %v566_v6 }
  0xdc   : > { %v672_v18 = vadd.f32 %v671_v36, %v566_v6 }
  0xdd   : > { %v691_v25 = vmax.f32 %v643_v15, 0.0 }
  0xde   : > { %v692_v27 = vmax.f32 %v672_v18, 0.0  ;;  %v864_v18 = vld [vmem:[%s1762_s13 + $0x8] sm:$0xff] }
  0xdf   : > { %v709_v31 = vpack.c.bf16 %v691_v25, %v689_v29  ;;  %v893_v25 = vmul.f32 %v873_v14, %v865_v21 }
  0xe0   : > { %v710_v32 = vpack.c.bf16 %v692_v27, %v690_v30 }
  0xe2   : > { %v645_v37 = vpop.f32.mrf.mxu0 }
  0xe3   : > { %v674_v38 = vpop.f32.mrf.mxu1  ;;  %v646_v10 = vadd.f32 %v645_v37, %v571_v49  ;;  %v1855_v37 = vld [vmem:[%s1762_s13 + $0x28] sm:$0xff] }
  0xe4   : > { %v675_v12 = vadd.f32 %v674_v38, %v571_v49  ;;  %v1858_v38 = vld [vmem:[%s1762_s13 + $0x38] sm:$0xff] }
  0xe5   : > { %v693_v22 = vmax.f32 %v646_v10, 0.0  ;;  %v1346_v10 = vld [vmem:[%s1952_s6] sm:$0xff] }
  0xe6   : > { %v694_v24 = vmax.f32 %v675_v12, 0.0  ;;  %v869_v12 = vld [vmem:[%s1762_s13 + $0x30] sm:$0xff] }
  0xea   : > { %v647_v39 = vpop.f32.mrf.mxu0 }
  0xeb   : > { %v676_v40 = vpop.f32.mrf.mxu1  ;;  %v648_v3 = vadd.f32 %v647_v39, %v576_v63  ;;  %v1861_v39 = vld [vmem:[%s1762_s13 + $0x48] sm:$0xff] }
  0xec   : > { %v677_v7 = vadd.f32 %v676_v40, %v576_v63 }
  0xed   : > { %v695_v16 = vmax.f32 %v648_v3, 0.0 }
  0xee   : > { %v696_v19 = vmax.f32 %v677_v7, 0.0 }
  0xef   : > { %v711_v26 = vpack.c.bf16 %v695_v16, %v693_v22  ;;  %v897_v16 = vmul.f32 %v873_v14, %v869_v12  ;;  %v892_v22 = vmul.f32 %v1861_v39, %v864_v18 }
  0xf0   : > { %v712_v28 = vpack.c.bf16 %v696_v19, %v694_v24  ;;  %v866_v19 = vld [vmem:[%s1762_s13 + $0x18] sm:$0xff] }
  0xf2   : > { %v650_v41 = vpop.f32.mrf.mxu0 }
  0xf3   : > { %v679_v42 = vpop.f32.mrf.mxu1  ;;  %v651_v60 = vadd.f32 %v650_v41, %v581_v45  ;;  %v1864_v41 = vld [vmem:[%s1762_s13 + $0x58] sm:$0xff] }
  0xf4   : > { %v680_v0 = vadd.f32 %v679_v42, %v581_v45  ;;  %v896_v42 = vmul.f32 %v1861_v39, %v1855_v37  ;;  %v894_v23 = vmul.f32 %v1864_v41, %v866_v19 }
  0xf5   : > { %v697_v11 = vmax.f32 %v651_v60, 0.0 }
  0xf6   : > { %v698_v13 = vmax.f32 %v680_v0, 0.0 }
  0xfa   : > { %v652_v43 = vpop.f32.mrf.mxu0 }
  0xfb   : > { %v681_v44 = vpop.f32.mrf.mxu1  ;;  %v653_v55 = vadd.f32 %v652_v43, %v586_v50 }
  0xfc   : > { %v682_v58 = vadd.f32 %v681_v44, %v586_v50  ;;  %v898_v44 = vmul.f32 %v1864_v41, %v1858_v38 }
  0xfd   : > { %v699_v4 = vmax.f32 %v653_v55, 0.0 }
  0xfe   : > { %v700_v8 = vmax.f32 %v682_v58, 0.0  ;;  %v916_v45 = vpack.c.bf16 %v898_v44, %v896_v42 }
  0xff   : > { %v713_v17 = vpack.c.bf16 %v699_v4, %v697_v11  ;;  %v867_v11 = vld [vmem:[%s1762_s13 + $0x20] sm:$0xff] }
 0x100   : > { %v714_v20 = vpack.c.bf16 %v700_v8, %v698_v13  ;;  %978 = vmatpush.bf16.msrb.mxu1 %v916_v45  ;;  %v871_v13 = vld [vmem:[%s1762_s13 + $0x40] sm:$0xff] }
 0x101   : > { %v895_v15 = vmul.f32 %v871_v13, %v867_v11 }
 0x102   : > { %v655_v47 = vpop.f32.mrf.mxu0 }
 0x103   : > { %v684_v48 = vpop.f32.mrf.mxu1  ;;  %v656_v52 = vadd.f32 %v655_v47, %v591_v46 }
 0x104   : > { %v685_v53 = vadd.f32 %v684_v48, %v591_v46  ;;  %v734_v46 = vpop.permute.xlu2 %733 }
 0x105   : > { %v701_v61 = vmax.f32 %v656_v52, 0.0 }
 0x106   : > { %v702_v1 = vmax.f32 %v685_v53, 0.0 }
 0x10a   : > { %v657_v54 = vpop.f32.mrf.mxu0 }
 0x10b   : > { %v658_v56 = vadd.f32 %v657_v54, %v596_v51  ;;  %v686_v57 = vpop.f32.mrf.mxu1 }
 0x10c   : > { %v687_v59 = vadd.f32 %v686_v57, %v596_v51  ;;  %v729_v49 = vpop.permute.xlu2 %728  ;;  %v739_v51 = vpop.permute.xlu0 %738 }
 0x10d   : > { %v703_v62 = vmax.f32 %v658_v56, 0.0  ;;  %v724_v57 = vpop.permute.xlu1 %723 }
 0x10e   : > { %v704_v2 = vmax.f32 %v687_v59, 0.0 }
 0x10f   : > { %v715_v5 = vpack.c.bf16 %v703_v62, %v701_v61 }
 0x110   : > { %v716_v9 = vpack.c.bf16 %v704_v2, %v702_v1 }
 0x111   : > { %762 = vmatpush.bf16.msra.mxu2 %v715_v5 }
 0x112   : > { %781 = vmatpush.bf16.msra.mxu3 %v716_v9 }
 0x114   : > { %v815_v30 = vpop.permute.xlu0 %814 }
 0x115   : > { %763 = vmatpush.bf16.msra.mxu2 %v713_v17  ;;  %v915_v17 = vpack.c.bf16 %v897_v16, %v895_v15 }
 0x116   : > { %782 = vmatpush.bf16.msra.mxu3 %v714_v20  ;;  %v863_v20 = vld [vmem:[%s1762_s13] sm:$0xff]  ;;  %s1163_s13 = sshll.u32 %s531_s12, 4  ;;  %s1164_s13 = int_to_ptr.vmem [resolvable:$true] %s1163_s13 }
 0x117   : > { %959 = vmatpush.bf16.msrb.mxu0 %v915_v17  ;;  %v891_v24 = vmul.f32 %v871_v13, %v863_v20 }
 0x119   : > { %764 = vmatpush.bf16.msra.mxu2 %v711_v26  ;;  %v914_v26 = vpack.c.bf16 %v894_v23, %v892_v22  ;;  %v913_v27 = vpack.c.bf16 %v893_v25, %v891_v24 }
 0x11a   : > { %783 = vmatpush.bf16.msra.mxu3 %v712_v28 }
 0x11b   : > { %979 = vmatpush.bf16.msrb.mxu1 %v914_v26  ;;  %960 = vmatpush.bf16.msrb.mxu0 %v913_v27 }
 0x11c   : > { %v939_v15 = vpop.permute.xlu0 %938 }
 0x11d   : > { %765 = vmatpush.bf16.msra.mxu2 %v709_v31 }
 0x11e   : > { %784 = vmatpush.bf16.msra.mxu3 %v710_v32 }
 0x120   : > { %1302 = vmatmul.msk.bf16.vlgmr.msra.gmra.mxu2 %vm751_vm1, %v1344_v33 }
 0x121   : > { %1304 = vmatmul.msk.bf16.vlgmr.msra.gmra.mxu3 %vm751_vm1, %v1344_v33  ;;  %v820_v33 = vpop.permute.xlu1 %819 }
 0x130   : > { %1303 = vmatmul.msk.bf16.gmra.mxu2 %vm751_vm1, %v1345_v34 }
 0x131   : > { %1305 = vmatmul.msk.bf16.gmra.mxu3 %vm751_vm1, %v1345_v34 }
 0x1a3   : > { %v767_v35 = vpop.f32.mrf.mxu2 }
 0x1a4   : > { %v786_v36 = vpop.f32.mrf.mxu3  ;;  %v768_v60 = vadd.f32 %v767_v35, %v724_v57 }
 0x1a5   : > { %v787_v63 = vadd.f32 %v786_v36, %v724_v57 }
 0x1a6   : > { %v796_v6 = vmax.f32 %v768_v60, 0.0 }
 0x1a7   : > { %v797_v7 = vmax.f32 %v787_v63, 0.0 }
 0x1ab   : > { %v769_v40 = vpop.f32.mrf.mxu2 }
 0x1ac   : > { %v788_v43 = vpop.f32.mrf.mxu3  ;;  %v770_v54 = vadd.f32 %v769_v40, %v729_v49 }
 0x1ad   : > { %v789_v58 = vadd.f32 %v788_v43, %v729_v49  ;;  %v885_v49 = vmul.f32 %v869_v12, %v865_v21 }
 0x1ae   : > { %v798_v2 = vmax.f32 %v770_v54, 0.0 }
 0x1af   : > { %v799_v4 = vmax.f32 %v789_v58, 0.0 }
 0x1b0   : > { %v806_v8 = vpack.c.bf16 %v798_v2, %v796_v6 }
 0x1b1   : > { %v807_v9 = vpack.c.bf16 %v799_v4, %v797_v7 }
 0x1b3   : > { %v772_v47 = vpop.f32.mrf.mxu2 }
 0x1b4   : > { %v791_v48 = vpop.f32.mrf.mxu3  ;;  %v773_v50 = vadd.f32 %v772_v47, %v734_v46 }
 0x1b5   : > { %v792_v52 = vadd.f32 %v791_v48, %v734_v46  ;;  %v883_v48 = vmul.f32 %v867_v11, %v863_v20 }
 0x1b6   : > { %v800_v61 = vmax.f32 %v773_v50, 0.0 }
 0x1b7   : > { %v801_v0 = vmax.f32 %v792_v52, 0.0  ;;  %v884_v52 = vmul.f32 %v1855_v37, %v864_v18 }
 0x1bb   : > { %v774_v53 = vpop.f32.mrf.mxu2 }
 0x1bc   : > { %v775_v55 = vadd.f32 %v774_v53, %v739_v51  ;;  %v793_v56 = vpop.f32.mrf.mxu3  ;;  %v886_v53 = vmul.f32 %v1858_v38, %v866_v19 }
 0x1bd   : > { %v794_v59 = vadd.f32 %v793_v56, %v739_v51  ;;  %v909_v56 = vpack.c.bf16 %v885_v49, %v883_v48 }
 0x1be   : > { %v802_v62 = vmax.f32 %v775_v55, 0.0  ;;  %v910_v57 = vpack.c.bf16 %v886_v53, %v884_v52 }
 0x1bf   : > { %v803_v1 = vmax.f32 %v794_v59, 0.0 }
 0x1c0   : > { %v808_v3 = vpack.c.bf16 %v802_v62, %v800_v61 }
 0x1c1   : > { %v809_v5 = vpack.c.bf16 %v803_v1, %v801_v0 }
 0x1c2   : > { %837 = vmatpush.bf16.msrb.mxu2 %v808_v3 }
 0x1c3   : > { %851 = vmatpush.bf16.msrb.mxu3 %v809_v5 }
 0x1c6   : > { %838 = vmatpush.bf16.msrb.mxu2 %v806_v8 }
 0x1c7   : > { %852 = vmatpush.bf16.msrb.mxu3 %v807_v9 }
 0x1c9   : > { %1310 = vmatmul.msk.bf16.vlgmr.msrb.gmra.mxu2 %vm827_vm2, %v1346_v10 }
 0x1ca   : > { %1311 = vmatmul.msk.bf16.vlgmr.msrb.gmra.mxu3 %vm827_vm2, %v1346_v10  ;;  %v934_v10 = vpop.permute.xlu2 %933 }
 0x24c   : > { %v840_v28 = vpop.f32.mrf.mxu2 }
 0x24d   : > { %v854_v29 = vpop.f32.mrf.mxu3  ;;  %v841_v31 = vadd.f32 %v840_v28, %v815_v30 }
 0x24e   : > { %v855_v32 = vadd.f32 %v854_v29, %v815_v30 }
 0x24f   : > { %v859_v35 = vmax.f32 %v841_v31, 0.0 }
 0x250   : > { %v860_v42 = vmax.f32 %v855_v32, 0.0 }
 0x251   : > { %v887_v46 = vmul.f32 %v871_v13, %v859_v35  ;;  %v879_v60 = vmul.f32 %v867_v11, %v859_v35  ;;  %v875_v0 = vmul.f32 %v863_v20, %v859_v35  ;;  %v929_v13 = vpop.permute.xlu2 %928 }
 0x252   : > { %v888_v50 = vmul.f32 %v1861_v39, %v860_v42  ;;  %v880_v39 = vmul.f32 %v1855_v37, %v860_v42  ;;  %v876_v1 = vmul.f32 %v864_v18, %v860_v42  ;;  %v1348_v37 = vld [vmem:[%s1992_s29 + $0x8] sm:$0xff] }
 0x254   : > { %v842_v34 = vpop.f32.mrf.mxu2 }
 0x255   : > { %v843_v36 = vadd.f32 %v842_v34, %v820_v33  ;;  %v856_v40 = vpop.f32.mrf.mxu3 }
 0x256   : > { %v857_v43 = vadd.f32 %v856_v40, %v820_v33 }
 0x257   : > { %v861_v44 = vmax.f32 %v843_v36, 0.0 }
 0x258   : > { %v862_v45 = vmax.f32 %v857_v43, 0.0 }
 0x259   : > { %v889_v47 = vmul.f32 %v873_v14, %v861_v44  ;;  %v881_v58 = vmul.f32 %v869_v12, %v861_v44  ;;  %v903_v4 = vpack.c.bf16 %v861_v44, %v859_v35 }
 0x25a   : > { %v890_v51 = vmul.f32 %v1864_v41, %v862_v45  ;;  %v882_v59 = vmul.f32 %v1858_v38, %v862_v45  ;;  %v877_v41 = vmul.f32 %v865_v21, %v861_v44  ;;  %v878_v63 = vmul.f32 %v866_v19, %v862_v45  ;;  %v1347_v38 = vld [vmem:[%s1992_s29] sm:$0xff]  ;;  %v924_v21 = vpop.permute.xlu1 %923 }
 0x25b   : > { %v911_v54 = vpack.c.bf16 %v889_v47, %v887_v46  ;;  %v907_v61 = vpack.c.bf16 %v881_v58, %v879_v60  ;;  %v904_v5 = vpack.c.bf16 %v862_v45, %v860_v42  ;;  %v1349_v42 = vld [vmem:[%s1993_s22] sm:$0xff]  ;;  %v1015_v45 = vpop.permute.xlu0 %1014  ;;  %v1069_v60 = vpop.permute.xlu2 %1068 }
 0x25c   : > { %v912_v55 = vpack.c.bf16 %v890_v51, %v888_v50  ;;  %v908_v62 = vpack.c.bf16 %v882_v59, %v880_v39  ;;  %v905_v2 = vpack.c.bf16 %v877_v41, %v875_v0  ;;  %v906_v3 = vpack.c.bf16 %v878_v63, %v876_v1  ;;  %v1062_v59 = vld [vmem:[%s1994_s23] sm:$0x1] }
 0x25d   : > { %961 = vmatpush.bf16.msrb.mxu0 %v911_v54  ;;  %v1071_v39 = vperm.slane %v1069_v60, 0 }
 0x25e   : > { %980 = vmatpush.bf16.msrb.mxu1 %v912_v55 }
 0x261   : > { %962 = vmatpush.bf16.msrb.mxu0 %v909_v56 }
 0x262   : > { %981 = vmatpush.bf16.msrb.mxu1 %v910_v57  ;;  %v1020_v47 = vpop.permute.xlu1 %1019 }
 0x265   : > { %963 = vmatpush.bf16.msrb.mxu0 %v907_v61 }
 0x266   : > { %982 = vmatpush.bf16.msrb.mxu1 %v908_v62 }
 0x269   : > { %964 = vmatpush.bf16.msrb.mxu0 %v905_v2 }
 0x26a   : > { %983 = vmatpush.bf16.msrb.mxu1 %v906_v3 }
 0x26d   : > { %965 = vmatpush.bf16.msrb.mxu0 %v903_v4 }
 0x26e   : > { %984 = vmatpush.bf16.msrb.mxu1 %v904_v5 }
 0x270   : > { %1320 = vmatmul.msk.bf16.vlgmr.msrb.gmra.mxu0 %vm951_vm3, %v1347_v38 }
 0x271   : > { %1322 = vmatmul.msk.bf16.vlgmr.msrb.gmra.mxu1 %vm951_vm3, %v1347_v38 }
 0x280   : > { %1321 = vmatmul.msk.bf16.gmra.mxu0 %vm951_vm3, %v1348_v37 }
 0x281   : > { %1323 = vmatmul.msk.bf16.gmra.mxu1 %vm951_vm3, %v1348_v37 }
 0x2ed   : > { %v967_v6 = vpop.f32.mrf.mxu0 }
 0x2ee   : > { %v986_v7 = vpop.f32.mrf.mxu1  ;;  %v968_v24 = vadd.f32 %v967_v6, %v924_v21 }
 0x2ef   : > { %v987_v27 = vadd.f32 %v986_v7, %v924_v21  ;;  %v1145_v21 = vlaneseq }
 0x2f0   : > { %v996_v34 = vmax.f32 %v968_v24, 0.0 }
 0x2f1   : > { %v997_v35 = vmax.f32 %v987_v27, 0.0  ;;  %vm1147_vm13 = vcmp.lt.s32.totalorder %v1145_v21, 256 }
 0x2f5   : > { %v969_v8 = vpop.f32.mrf.mxu0 }
 0x2f6   : > { %v988_v9 = vpop.f32.mrf.mxu1  ;;  %v970_v18 = vadd.f32 %v969_v8, %v929_v13 }
 0x2f7   : > { %v989_v22 = vadd.f32 %v988_v9, %v929_v13 }
 0x2f8   : > { %v998_v30 = vmax.f32 %v970_v18, 0.0 }
 0x2f9   : > { %v999_v32 = vmax.f32 %v989_v22, 0.0 }
 0x2fa   : > { %v1006_v36 = vpack.c.bf16 %v998_v30, %v996_v34 }
 0x2fb   : > { %v1007_v40 = vpack.c.bf16 %v999_v32, %v997_v35 }
 0x2fd   : > { %v972_v11 = vpop.f32.mrf.mxu0 }
 0x2fe   : > { %v991_v12 = vpop.f32.mrf.mxu1  ;;  %v973_v14 = vadd.f32 %v972_v11, %v934_v10 }
 0x2ff   : > { %v992_v16 = vadd.f32 %v991_v12, %v934_v10 }
 0x300   : > { %v1000_v25 = vmax.f32 %v973_v14, 0.0 }
 0x301   : > { %v1001_v28 = vmax.f32 %v992_v16, 0.0 }
 0x305   : > { %v974_v17 = vpop.f32.mrf.mxu0 }
 0x306   : > { %v975_v19 = vadd.f32 %v974_v17, %v939_v15  ;;  %v993_v20 = vpop.f32.mrf.mxu1 }
 0x307   : > { %v994_v23 = vadd.f32 %v993_v20, %v939_v15 }
 0x308   : > { %v1002_v26 = vmax.f32 %v975_v19, 0.0 }
 0x309   : > { %v1003_v29 = vmax.f32 %v994_v23, 0.0 }
 0x30a   : > { %v1008_v31 = vpack.c.bf16 %v1002_v26, %v1000_v25 }
 0x30b   : > { %v1009_v33 = vpack.c.bf16 %v1003_v29, %v1001_v28 }
 0x30c   : > { %1036 = vmatpush.bf16.msra.mxu2 %v1008_v31 }
 0x30d   : > { %1050 = vmatpush.bf16.msra.mxu3 %v1009_v33 }
 0x310   : > { %1037 = vmatpush.bf16.msra.mxu2 %v1006_v36 }
 0x311   : > { %1051 = vmatpush.bf16.msra.mxu3 %v1007_v40 }
 0x313   : > { %1328 = vmatmul.msk.bf16.vlgmr.msra.gmra.mxu2 %vm827_vm2, %v1349_v42 }
 0x314   : > { %1329 = vmatmul.msk.bf16.vlgmr.msra.gmra.mxu3 %vm827_vm2, %v1349_v42 }
 0x396   : > { %v1039_v43 = vpop.f32.mrf.mxu2 }
 0x397   : > { %v1053_v44 = vpop.f32.mrf.mxu3  ;;  %v1040_v46 = vadd.f32 %v1039_v43, %v1015_v45 }
 0x398   : > { %v1054_v48 = vadd.f32 %v1053_v44, %v1015_v45 }
 0x399   : > { %v1058_v53 = vmax.f32 %v1040_v46, 0.0 }
 0x39a   : > { %v1059_v55 = vmax.f32 %v1054_v48, 0.0 }
 0x39e   : > { %v1041_v49 = vpop.f32.mrf.mxu2 }
 0x39f   : > { %v1042_v50 = vadd.f32 %v1041_v49, %v1020_v47  ;;  %v1055_v51 = vpop.f32.mrf.mxu3 }
 0x3a0   : > { %v1056_v52 = vadd.f32 %v1055_v51, %v1020_v47 }
 0x3a1   : > { %v1060_v54 = vmax.f32 %v1042_v50, 0.0 }
 0x3a2   : > { %v1061_v56 = vmax.f32 %v1056_v52, 0.0 }
 0x3a3   : > { %v1063_v57 = vpack.c.bf16 %v1060_v54, %v1058_v53 }
 0x3a4   : > { %v1064_v58 = vpack.c.bf16 %v1061_v56, %v1059_v55 }
 0x3a5   : > { %1082 = vmatpush.bf16.msrb.mxu2 %v1063_v57 }
 0x3a6   : > { %1095 = vmatpush.bf16.msrb.mxu3 %v1064_v58 }
 0x3a8   : > { %1330 = vmatmul.msk.bf16.vlgmr.msrb.gmra.mxu2 %vm618_vm0, %v1062_v59 }
 0x3a9   : > { %1331 = vmatmul.msk.bf16.vlgmr.msrb.gmra.mxu3 %vm618_vm0, %v1062_v59 }
 0x42b   : > { %v1084_v61 = vpop.f32.mrf.mxu2 }
 0x42c   : > { %v1085_v41 = vadd.f32 %v1084_v61, %v1071_v39  ;;  %v1097_v62 = vpop.f32.mrf.mxu3 }
 0x42d   : > { %v1098_v63 = vadd.f32 %v1097_v62, %v1071_v39 }
 0x42e   : > { %v1332_v0 = vmul.f32 -1.442695, %v1085_v41 }
 0x42f   : > { %v1333_v1 = vmul.f32 -1.442695, %v1098_v63 }
 0x430   : > { %1410 = vpow2.f32 %v1332_v0 }
 0x431   : > { %1412 = vpow2.f32 %v1333_v1 }
 0x433   : > { %v1086_v2 = vpop.f32.mrf.mxu2 }
 0x434   : > { %v1099_v3 = vpop.f32.mrf.mxu3 }
 0x436   : > { %v1411_v4 = vpop.eup %1410 }
 0x437   : > { %v1413_v5 = vpop.eup %1412  ;;  %v1107_v38 = vadd.f32 1.0, %v1411_v4 }
 0x438   : > { %v1108_v37 = vadd.f32 1.0, %v1413_v5 }
 0x439   : > { %1414 = vrcp.f32 %v1107_v38  ;;  %vm1114_vm6 = vweird.f32 %v1107_v38  ;;  %v1120_v16 = vand.u32 2147483648, %v1107_v38  ;;  %v1118_v20 = vand.u32 2147483647, %v1107_v38 }
 0x43a   : > { %1416 = vrcp.f32 %v1108_v37  ;;  %v1135_v13 = vand.u32 2147483648, %v1108_v37  ;;  %v1133_v15 = vand.u32 2147483647, %v1108_v37  ;;  %vm1129_vm7 = vweird.f32 %v1108_v37 }
 0x43b   : > { %v1121_v25 = vor.u32 1.1754944e-38, %v1120_v16  ;;  %vm1119_vm12 = vcmp.eq.f32.partialorder %v1118_v20, 8.507059e+37 }
 0x43c   : > { %v1136_v22 = vor.u32 1.1754944e-38, %v1135_v13  ;;  %vm1134_vm10 = vcmp.eq.f32.partialorder %v1133_v15, 8.507059e+37 }
 0x43f   : > { %v1415_v6 = vpop.eup %1414 }
 0x440   : > { %v1417_v7 = vpop.eup %1416  ;;  %v1110_v8 = vmul.f32 %v1415_v6, %v1107_v38  ;;  %vm1115_vm4 = vweird.f32 %v1415_v6 }
 0x441   : > { %v1125_v9 = vmul.f32 %v1417_v7, %v1108_v37  ;;  %vm1130_vm5 = vweird.f32 %v1417_v7  ;;  %vm1912_vm8 = vmor %vm1114_vm6, %vm1115_vm4 }
 0x442   : > { %v1111_v10 = vsub.f32 1.0, %v1110_v8  ;;  %vm1131_vm9 = vmor %vm1129_vm7, %vm1130_vm5 }
 0x443   : > { %v1126_v11 = vsub.f32 1.0, %v1125_v9 }
 0x444   : > { %v1112_v12 = vmul.f32 %v1415_v6, %v1111_v10 }
 0x445   : > { %v1127_v14 = vmul.f32 %v1417_v7, %v1126_v11 }
 0x446   : > { %v1113_v17 = vadd.f32 %v1415_v6, %v1112_v12 }
 0x447   : > { %v1128_v18 = vadd.f32 %v1417_v7, %v1127_v14 }
 0x448   : > { %v1117_v23 = vsel %vm1912_vm8, %v1415_v6, %v1113_v17 }
 0x449   : > { %v1132_v24 = vsel %vm1131_vm9, %v1417_v7, %v1128_v18  ;;  %v1122_v28 = vsel %vm1119_vm12, %v1121_v25, %v1117_v23 }
 0x44a   : > { %v1137_v26 = vsel %vm1134_vm10, %v1136_v22, %v1132_v24 }
 0x44b   : > { %v1141_v27 = vrot.slane %v1137_v26, 7 }
 0x44d   : > { %v1143_v29 = vsel %vm1142_vm11, %v1122_v28, %v1141_v27 }
 0x44e   : > { %1149 = vst.msk [vmem:[%s531_s12] sm:$0x3] %vm1147_vm13, %v1143_v29 }
 0x44f   : > { %1505 = shalt.err (!%p1502_p3)
}
 0x450   : > { %1356 = dma.vmem_to_hbm [thread:$0]  (%p1681_p10), %s1164_s13, 32, %s1166_s26, %s1151_s30  }
 0x451 PF: > { %s2000_s0 = sld [smem:[#allocation12_spill]]  ;;  %p1370_p4 = scmp.ge.s32.totalorder %s1548_s18, 2 }
 0x453   : > { %p1366_p13 = pnand %p1370_p4, %p1685_p11 }
 0x455   : > { %p1367_p5 = pneg %p1366_p13 }
 0x457   : > { %s1177_s24 = sand.u32 1, %s2000_s0  }
 0x458   : > { %s1178_s28 = scalar_lea.sflag [#allocation5], %s1177_s24 }
 0x459   : > { %1531 = dma.done.wait (%p1367_p5), %s1178_s28, 32  }
 0x45a   : > { %1533 = vsyncadd (%p1367_p5), %s1178_s28, 4294967264  ;;  %s2002_s18 = sld [smem:[#allocation15_spill]]  ;;  %s2005_s15 = smov %s1540_s16 }
 0x45b   : > { %s2003_s8 = sld [smem:[#allocation13_spill]] }
 0x45c   : > { %s2004_s17 = sld [smem:[#allocation16_spill]] }
 0x460   : > { %p32_p7 = scmp.ge.s32.totalorder %s2002_s18, 6  }
 0x461   : > { %s2006_s16 = smov %s2003_s8 }
 0x462   :  { %34 = sbr.rel (!%p32_p7) target bundleno = 13 (0xd), region = 134 }
 0x467   :  { %1184 = vsyncpa [#allocation4], 1 }
 0x468   :  { %1186 = vsyncpa [#allocation4 + $0x1], 1 }
 0x469   :  { %1187 = vsyncpa [#allocation7], 1 }
 0x46a   :  { %1189 = vsyncpa [#allocation7 + $0x1], 1 }
 0x46b   :  { %1190 = vsyncpa [#allocation5], 1 }
 0x46c   :  { %1192 = vsyncpa [#allocation5 + $0x1], 1 }

</bundles_post_ra>
